<compile_context>
chip_gen: v5e
topology: v5e:2x2
jax: 0.10.0
libtpu: 0.0.40
codegen_flags: <defaults>
</compile_context>

<pallas_src>
import jax
import jax.numpy as jnp
from jax import lax
from jax.experimental import pallas as pl
from jax.experimental.pallas import tpu as pltpu

BN_EPS = 1e-5
NORM_EPS = 1e-12

# Contract last axis of a with last axis of b (PyTorch (out,in) weight layout,
# so no in-kernel transpose / relayout is needed).
_CLL = (((1,), (1,)), ((), ()))


def _multihead_kernel(x_ref, w1_ref, bn_ref, w2_ref, b2_ref, wp_ref,
                      logits_ref, z_ref, z_sc):
    p = pl.program_id(1)

    @pl.when(p == 0)
    def _projector():
        x = x_ref[...]                                   # (B, Din)  compute dtype
        w1 = w1_ref[0]                                   # (Hid, Din) compute dtype
        bn = bn_ref[0]                                   # (3, Hid)  f32
        b1, gamma, beta = bn[0:1, :], bn[1:2, :], bn[2:3, :]

        # Linear-1 (bf16/f32 inputs, f32 accumulation).
        h = lax.dot_general(x, w1, _CLL,
                            preferred_element_type=jnp.float32) + b1

        # BatchNorm1d, training mode: batch mean, biased batch var, fused affine.
        mean = jnp.mean(h, axis=0, keepdims=True)
        centered = h - mean
        var = jnp.mean(centered * centered, axis=0, keepdims=True)
        h = jnp.maximum(centered * (gamma * lax.rsqrt(var + BN_EPS)) + beta, 0.0)

        # Linear-2.
        z = lax.dot_general(h.astype(w2_ref.dtype), w2_ref[0], _CLL,
                            preferred_element_type=jnp.float32) + b2_ref[0]

        # F.normalize(dim=-1): rsqrt(max(||z||^2, eps^2)) in f32.
        sumsq = jnp.sum(z * z, axis=-1, keepdims=True)
        z = z * lax.rsqrt(jnp.maximum(sumsq, NORM_EPS * NORM_EPS))

        z_sc[...] = z                                    # f32, resident over P tiles
        z_ref[0] = z.astype(z_ref.dtype)

    # Every grid step: one streamed prototype tile (tP, Dout) -> (B, tP) logits.
    logits = lax.dot_general(z_sc[...].astype(wp_ref.dtype), wp_ref[0], _CLL,
                             preferred_element_type=jnp.float32)
    logits_ref[0] = logits.astype(logits_ref.dtype)


def pack_params(params, compute_dtype=jnp.float32):
    """One-time, layout-only parameter packing (call once, NOT per forward)."""
    w1, b1, gamma, beta = params["w1"], params["b1"], params["gamma"], params["beta"]
    w2, b2, wp = params["w2"], params["b2"], params["wp"]
    H, Hid, _ = w1.shape
    Dout = w2.shape[1]
    bn = jnp.stack([b1.reshape(H, Hid), gamma.reshape(H, Hid),
                    beta.reshape(H, Hid)], axis=1).astype(jnp.float32)      # (H,3,Hid)
    return dict(
        w1=w1.astype(compute_dtype),                     # (H, Hid, Din)
        bn=bn,                                           # (H, 3, Hid)   f32 (tiny)
        w2=w2.astype(compute_dtype),                     # (H, Dout, Hid)
        b2=b2.reshape(H, 1, Dout).astype(jnp.float32),   # (H, 1, Dout)  f32 (tiny)
        wp=wp.astype(compute_dtype),                     # (H, P, Dout)
    )


def _choose_p_tile(num_prototypes, max_p_tile):
    """Largest lane-dense divisor of P that is <= max_p_tile (multiple of 128)."""
    if num_prototypes <= max_p_tile:
        return num_prototypes
    t = (max_p_tile // 128) * 128
    while t >= 128:
        if num_prototypes % t == 0:
            return t
        t -= 128
    return num_prototypes      # fall back: single (un-tiled) block


def multihead_forward(feats, packed, *, max_p_tile=1024):
    """feats: (B, Din). packed: output of pack_params()."""
    w1, bn, w2, b2, wp = (packed["w1"], packed["bn"], packed["w2"],
                          packed["b2"], packed["wp"])
    H, Hid, Din = w1.shape
    Dout = w2.shape[1]
    P = wp.shape[1]
    B = feats.shape[0]
    cdt = w1.dtype
    feats = feats.astype(cdt)

    tP = _choose_p_tile(P, max_p_tile)
    n_p = P // tP

    # Rough VMEM budget (double-buffered streamed blocks + f32 activations),
    # clamped so the same source stays inside v7x's 64 MiB physical VMEM.
    w_itm = jnp.dtype(cdt).itemsize
    est = (2 * (Hid * Din + Dout * Hid + tP * Dout) * w_itm
           + 2 * (3 * Hid + Dout) * 4
           + B * Din * w_itm
           + 4 * (B * Hid + 3 * B * Dout + 2 * B * tP))
    vmem_limit = int(min(max(3 * est, 32 * 2 ** 20), 64 * 2 ** 20))

    logits, z = pl.pallas_call(
        _multihead_kernel,
        grid_spec=pltpu.PrefetchScalarGridSpec(
            num_scalar_prefetch=0,
            grid=(H, n_p),
            in_specs=[
                # feats: constant block index -> fetched once for the whole grid.
                pl.BlockSpec((B, Din), lambda h, p: (0, 0)),
                # Per-head weights: constant along the P axis -> no per-tile re-DMA.
                pl.BlockSpec((1, Hid, Din), lambda h, p: (h, 0, 0)),
                pl.BlockSpec((1, 3, Hid), lambda h, p: (h, 0, 0)),
                pl.BlockSpec((1, Dout, Hid), lambda h, p: (h, 0, 0)),
                pl.BlockSpec((1, 1, Dout), lambda h, p: (h, 0, 0)),
                # Prototypes: only the real (tP, Dout) slice of head h is streamed.
                pl.BlockSpec((1, tP, Dout), lambda h, p: (h, p, 0)),
            ],
            out_specs=(
                pl.BlockSpec((1, B, tP), lambda h, p: (h, 0, p)),     # logits
                pl.BlockSpec((1, B, Dout), lambda h, p: (h, 0, 0)),   # z
            ),
            scratch_shapes=[pltpu.VMEM((B, Dout), jnp.float32)],
        ),
        out_shape=(
            jax.ShapeDtypeStruct((H, B, P), jnp.float32),
            jax.ShapeDtypeStruct((H, B, Dout), jnp.float32),
        ),
        compiler_params=pltpu.CompilerParams(
            dimension_semantics=("parallel", "arbitrary"),
            vmem_limit_bytes=vmem_limit),
    )(feats, w1, bn, w2, b2, wp)
    return logits, z


def init_params(key, num_heads, input_dim, hidden_dim, output_dim, num_prototypes):
    ks = jax.random.split(key, 5)
    w1 = jax.random.normal(ks[0], (num_heads, hidden_dim, input_dim), jnp.float32) * 0.1
    b1 = jax.random.normal(ks[1], (num_heads, hidden_dim), jnp.float32) * 0.1
    gamma = jnp.ones((num_heads, hidden_dim), jnp.float32)      # BatchNorm1d defaults
    beta = jnp.zeros((num_heads, hidden_dim), jnp.float32)
    w2 = jax.random.normal(ks[2], (num_heads, output_dim, hidden_dim), jnp.float32) * 0.1
    b2 = jax.random.normal(ks[3], (num_heads, output_dim), jnp.float32) * 0.1
    wp = jax.random.normal(ks[4], (num_heads, num_prototypes, output_dim), jnp.float32)
    # Prototypes.normalize_prototypes(): L2-normalize rows (done once at init).
    wp = wp / jnp.maximum(
        jnp.sqrt(jnp.sum(wp * wp, axis=-1, keepdims=True)), NORM_EPS)
    return dict(w1=w1, b1=b1, gamma=gamma, beta=beta, w2=w2, b2=b2, wp=wp)


def reference_forward(feats, params):
    """Pure-JAX f32 reference mirroring the PyTorch forward."""
    hp = lax.Precision.HIGHEST
    logits_list, z_list = [], []
    H = params["w1"].shape[0]
    for h in range(H):
        y = jnp.dot(feats, params["w1"][h].T, precision=hp) + params["b1"][h][None, :]
        mean = jnp.mean(y, axis=0, keepdims=True)
        var = jnp.mean((y - mean) ** 2, axis=0, keepdims=True)
        y = ((y - mean) / jnp.sqrt(var + BN_EPS) * params["gamma"][h][None, :]
             + params["beta"][h][None, :])
        y = jnp.maximum(y, 0.0)
        z = jnp.dot(y, params["w2"][h].T, precision=hp) + params["b2"][h][None, :]
        z = z / jnp.maximum(jnp.sqrt(jnp.sum(z * z, axis=-1, keepdims=True)), NORM_EPS)
        logits_list.append(jnp.dot(z, params["wp"][h].T, precision=hp))
        z_list.append(z)
    return jnp.stack(logits_list), jnp.stack(z_list)


if __name__ == "__main__":
    B, input_dim, hidden_dim, output_dim = 8, 32, 32, 16
    num_prototypes, num_heads = 256, 3      # P=256, tP=128 -> grid = (3 heads, 2 P-tiles)

    key = jax.random.PRNGKey(0)
    k_feats, k_params = jax.random.split(key)
    feats = jax.random.normal(k_feats, (B, input_dim), jnp.float32)
    params = init_params(k_params, num_heads, input_dim, hidden_dim,
                         output_dim, num_prototypes)

    logits_ref, z_ref = reference_forward(feats, params)

    # --- f32 operand path (semantic check) -----------------------------------
    packed_f32 = pack_params(params, compute_dtype=jnp.float32)
    logits, z = multihead_forward(feats, packed_f32, max_p_tile=128)
    jax.block_until_ready((logits, z))
    assert logits.shape == (num_heads, B, num_prototypes)
    assert z.shape == (num_heads, B, output_dim)
    # Tolerance covers possible reduced-precision f32 MXU passes across TPU gens.
    assert jnp.allclose(logits, logits_ref, atol=2e-2, rtol=2e-2)
    assert jnp.allclose(z, z_ref, atol=2e-2, rtol=2e-2)

    # --- bf16 operand path (production/perf config per review) ---------------
    packed_bf16 = pack_params(params, compute_dtype=jnp.bfloat16)
    logits_b, z_b = multihead_forward(feats, packed_bf16, max_p_tile=128)
    jax.block_until_ready((logits_b, z_b))
    assert jnp.allclose(logits_b, logits_ref, atol=5e-2, rtol=5e-2)
    assert jnp.allclose(z_b, z_ref, atol=5e-2, rtol=5e-2)

    print("KERNEL_OK")
</pallas_src>

<mosaic_0001>
module attributes {stable_mosaic.version = 11 : i64} {
  func.func @_multihead_kernel(%arg0: i32, %arg1: i32, %arg2: memref<8x32xf32, #tpu.memory_space<vmem>>, %arg3: memref<1x32x32xf32, #tpu.memory_space<vmem>>, %arg4: memref<1x3x32xf32, #tpu.memory_space<vmem>>, %arg5: memref<1x16x32xf32, #tpu.memory_space<vmem>>, %arg6: memref<1x1x16xf32, #tpu.memory_space<vmem>>, %arg7: memref<1x128x16xf32, #tpu.memory_space<vmem>>, %arg8: memref<1x8x128xf32, #tpu.memory_space<vmem>>, %arg9: memref<1x8x16xf32, #tpu.memory_space<vmem>>, %arg10: memref<8x16xf32, #tpu.memory_space<vmem>>) attributes {dimension_semantics = [#tpu.dimension_semantics<parallel>, #tpu.dimension_semantics<arbitrary>], iteration_bounds = array<i64: 3, 2>, scalar_prefetch = 0 : i64, scratch_operands = 1 : i64, tpu.core_type = #tpu.core_type<tc>, window_params = [{pipeline_mode = #tpu.pipeline_mode<synchronous>, transform_indices = @transform_0, window_bounds = array<i64: 8, 32>}, {transform_indices = @transform_1, window_bounds = array<i64: 1, 32, 32>}, {transform_indices = @transform_2, window_bounds = array<i64: 1, 3, 32>}, {transform_indices = @transform_3, window_bounds = array<i64: 1, 16, 32>}, {transform_indices = @transform_4, window_bounds = array<i64: 1, 1, 16>}, {transform_indices = @transform_5, window_bounds = array<i64: 1, 128, 16>}, {transform_indices = @transform_6, window_bounds = array<i64: 1, 8, 128>}, {transform_indices = @transform_7, window_bounds = array<i64: 1, 8, 16>}]} {
    %c0_i32 = arith.constant 0 : i32
    %0 = arith.cmpi eq, %arg1, %c0_i32 : i32
    %1 = arith.extui %0 : i1 to i32
    %c0_i32_0 = arith.constant 0 : i32
    %2 = arith.cmpi ne, %1, %c0_i32_0 : i32
    scf.if %2 {
      %c0_8 = arith.constant 0 : index
      %c0_9 = arith.constant 0 : index
      %10 = vector.load %arg2[%c0_8, %c0_9] : memref<8x32xf32, #tpu.memory_space<vmem>>, vector<8x32xf32>
      %c0_10 = arith.constant 0 : index
      %c0_11 = arith.constant 0 : index
      %c0_12 = arith.constant 0 : index
      %11 = vector.load %arg3[%c0_10, %c0_11, %c0_12] : memref<1x32x32xf32, #tpu.memory_space<vmem>>, vector<1x32x32xf32>
      %12 = vector.shape_cast %11 : vector<1x32x32xf32> to vector<32x32xf32>
      %c0_13 = arith.constant 0 : index
      %c0_14 = arith.constant 0 : index
      %c0_15 = arith.constant 0 : index
      %13 = vector.load %arg4[%c0_13, %c0_14, %c0_15] : memref<1x3x32xf32, #tpu.memory_space<vmem>>, vector<1x3x32xf32>
      %14 = vector.shape_cast %13 : vector<1x3x32xf32> to vector<3x32xf32>
      %15 = vector.extract_strided_slice %14 {offsets = [0, 0], sizes = [1, 32], strides = [1, 1]} : vector<3x32xf32> to vector<1x32xf32>
      %16 = vector.extract_strided_slice %14 {offsets = [1, 0], sizes = [1, 32], strides = [1, 1]} : vector<3x32xf32> to vector<1x32xf32>
      %17 = vector.extract_strided_slice %14 {offsets = [2, 0], sizes = [1, 32], strides = [1, 1]} : vector<3x32xf32> to vector<1x32xf32>
      %cst_16 = arith.constant dense<0.000000e+00> : vector<8x32xf32>
      %18 = tpu.matmul %10, %12, %cst_16 {dimension_numbers = #tpu.dot_dimension_numbers<[1], [1], [0], [0], [0, 0, 1, 0], [], []>} : vector<8x32xf32>, vector<32x32xf32>, vector<8x32xf32> -> vector<8x32xf32>
      %19 = vector.broadcast %15 : vector<1x32xf32> to vector<8x32xf32>
      %20 = arith.addf %18, %19 : vector<8x32xf32>
      %cst_17 = arith.constant dense<0.000000e+00> : vector<32xf32>
      %21 = vector.multi_reduction <add>, %20, %cst_17 [0] : vector<8x32xf32> to vector<32xf32>
      %22 = vector.shape_cast %21 : vector<32xf32> to vector<1x32xf32>
      %cst_18 = arith.constant 8.000000e+00 : f32
      %23 = vector.broadcast %cst_18 : f32 to vector<1x32xf32>
      %24 = arith.divf %22, %23 : vector<1x32xf32>
      %25 = vector.broadcast %24 : vector<1x32xf32> to vector<8x32xf32>
      %26 = arith.subf %20, %25 : vector<8x32xf32>
      %27 = arith.mulf %26, %26 : vector<8x32xf32>
      %cst_19 = arith.constant dense<0.000000e+00> : vector<32xf32>
      %28 = vector.multi_reduction <add>, %27, %cst_19 [0] : vector<8x32xf32> to vector<32xf32>
      %29 = vector.shape_cast %28 : vector<32xf32> to vector<1x32xf32>
      %cst_20 = arith.constant 8.000000e+00 : f32
      %30 = vector.broadcast %cst_20 : f32 to vector<1x32xf32>
      %31 = arith.divf %29, %30 : vector<1x32xf32>
      %cst_21 = arith.constant 9.99999974E-6 : f32
      %32 = vector.broadcast %cst_21 : f32 to vector<1x32xf32>
      %33 = arith.addf %31, %32 : vector<1x32xf32>
      %34 = math.rsqrt %33 : vector<1x32xf32>
      %35 = arith.mulf %16, %34 : vector<1x32xf32>
      %36 = vector.broadcast %35 : vector<1x32xf32> to vector<8x32xf32>
      %37 = arith.mulf %26, %36 : vector<8x32xf32>
      %38 = vector.broadcast %17 : vector<1x32xf32> to vector<8x32xf32>
      %39 = arith.addf %37, %38 : vector<8x32xf32>
      %cst_22 = arith.constant 0.000000e+00 : f32
      %40 = vector.broadcast %cst_22 : f32 to vector<8x32xf32>
      %41 = arith.maximumf %39, %40 : vector<8x32xf32>
      %c0_23 = arith.constant 0 : index
      %c0_24 = arith.constant 0 : index
      %c0_25 = arith.constant 0 : index
      %42 = vector.load %arg5[%c0_23, %c0_24, %c0_25] : memref<1x16x32xf32, #tpu.memory_space<vmem>>, vector<1x16x32xf32>
      %43 = vector.shape_cast %42 : vector<1x16x32xf32> to vector<16x32xf32>
      %cst_26 = arith.constant dense<0.000000e+00> : vector<8x16xf32>
      %44 = tpu.matmul %41, %43, %cst_26 {dimension_numbers = #tpu.dot_dimension_numbers<[1], [1], [0], [0], [0, 0, 1, 0], [], []>} : vector<8x32xf32>, vector<16x32xf32>, vector<8x16xf32> -> vector<8x16xf32>
      %c0_27 = arith.constant 0 : index
      %c0_28 = arith.constant 0 : index
      %c0_29 = arith.constant 0 : index
      %45 = vector.load %arg6[%c0_27, %c0_28, %c0_29] : memref<1x1x16xf32, #tpu.memory_space<vmem>>, vector<1x1x16xf32>
      %46 = vector.shape_cast %45 : vector<1x1x16xf32> to vector<1x16xf32>
      %47 = vector.broadcast %46 : vector<1x16xf32> to vector<8x16xf32>
      %48 = arith.addf %44, %47 : vector<8x16xf32>
      %49 = arith.mulf %48, %48 : vector<8x16xf32>
      %cst_30 = arith.constant dense<0.000000e+00> : vector<8xf32>
      %50 = vector.multi_reduction <add>, %49, %cst_30 [1] : vector<8x16xf32> to vector<8xf32>
      %51 = vector.shape_cast %50 : vector<8xf32> to vector<8x1xf32>
      %cst_31 = arith.constant 1.000000e-24 : f32
      %52 = vector.broadcast %cst_31 : f32 to vector<8x1xf32>
      %53 = arith.maximumf %51, %52 : vector<8x1xf32>
      %54 = math.rsqrt %53 : vector<8x1xf32>
      %55 = vector.broadcast %54 : vector<8x1xf32> to vector<8x16xf32>
      %56 = arith.mulf %48, %55 : vector<8x16xf32>
      %c0_32 = arith.constant 0 : index
      %c0_33 = arith.constant 0 : index
      %57 = vector.load %arg10[%c0_32, %c0_33] : memref<8x16xf32, #tpu.memory_space<vmem>>, vector<8x16xf32>
      tpu.vector_store %arg10[%c0_32, %c0_33], %56 {strides = array<i32>} : memref<8x16xf32, #tpu.memory_space<vmem>>, vector<8x16xf32>,
      %c0_34 = arith.constant 0 : index
      %c0_35 = arith.constant 0 : index
      %c0_36 = arith.constant 0 : index
      %58 = vector.load %arg9[%c0_34, %c0_35, %c0_36] : memref<1x8x16xf32, #tpu.memory_space<vmem>>, vector<1x8x16xf32>
      %59 = vector.shape_cast %58 : vector<1x8x16xf32> to vector<8x16xf32>
      %60 = vector.shape_cast %56 : vector<8x16xf32> to vector<1x8x16xf32>
      tpu.vector_store %arg9[%c0_34, %c0_35, %c0_36], %60 {strides = array<i32>} : memref<1x8x16xf32, #tpu.memory_space<vmem>>, vector<1x8x16xf32>,
    } else {
    }
    %c0 = arith.constant 0 : index
    %c0_1 = arith.constant 0 : index
    %3 = vector.load %arg10[%c0, %c0_1] : memref<8x16xf32, #tpu.memory_space<vmem>>, vector<8x16xf32>
    %c0_2 = arith.constant 0 : index
    %c0_3 = arith.constant 0 : index
    %c0_4 = arith.constant 0 : index
    %4 = vector.load %arg7[%c0_2, %c0_3, %c0_4] : memref<1x128x16xf32, #tpu.memory_space<vmem>>, vector<1x128x16xf32>
    %5 = vector.shape_cast %4 : vector<1x128x16xf32> to vector<128x16xf32>
    %cst = arith.constant dense<0.000000e+00> : vector<8x128xf32>
    %6 = tpu.matmul %3, %5, %cst {dimension_numbers = #tpu.dot_dimension_numbers<[1], [1], [0], [0], [0, 0, 1, 0], [], []>} : vector<8x16xf32>, vector<128x16xf32>, vector<8x128xf32> -> vector<8x128xf32>
    %c0_5 = arith.constant 0 : index
    %c0_6 = arith.constant 0 : index
    %c0_7 = arith.constant 0 : index
    %7 = vector.load %arg8[%c0_5, %c0_6, %c0_7] : memref<1x8x128xf32, #tpu.memory_space<vmem>>, vector<1x8x128xf32>
    %8 = vector.shape_cast %7 : vector<1x8x128xf32> to vector<8x128xf32>
    %9 = vector.shape_cast %6 : vector<8x128xf32> to vector<1x8x128xf32>
    tpu.vector_store %arg8[%c0_5, %c0_6, %c0_7], %9 {strides = array<i32>} : memref<1x8x128xf32, #tpu.memory_space<vmem>>, vector<1x8x128xf32>,
    return
  }
  func.func @transform_0(%arg0: i32, %arg1: i32) -> (i32, i32) {
    %c0_i32 = arith.constant 0 : i32
    %c0_i32_0 = arith.constant 0 : i32
    %c0_i32_1 = arith.constant 0 : i32
    return %c0_i32, %c0_i32_0 : i32, i32
  }
  func.func @transform_1(%arg0: i32, %arg1: i32) -> (i32, i32, i32) {
    %c0_i32 = arith.constant 0 : i32
    %c0_i32_0 = arith.constant 0 : i32
    %c0_i32_1 = arith.constant 0 : i32
    return %arg0, %c0_i32, %c0_i32_0 : i32, i32, i32
  }
  func.func @transform_2(%arg0: i32, %arg1: i32) -> (i32, i32, i32) {
    %c0_i32 = arith.constant 0 : i32
    %c0_i32_0 = arith.constant 0 : i32
    %c0_i32_1 = arith.constant 0 : i32
    return %arg0, %c0_i32, %c0_i32_0 : i32, i32, i32
  }
  func.func @transform_3(%arg0: i32, %arg1: i32) -> (i32, i32, i32) {
    %c0_i32 = arith.constant 0 : i32
    %c0_i32_0 = arith.constant 0 : i32
    %c0_i32_1 = arith.constant 0 : i32
    return %arg0, %c0_i32, %c0_i32_0 : i32, i32, i32
  }
  func.func @transform_4(%arg0: i32, %arg1: i32) -> (i32, i32, i32) {
    %c0_i32 = arith.constant 0 : i32
    %c0_i32_0 = arith.constant 0 : i32
    %c0_i32_1 = arith.constant 0 : i32
    return %arg0, %c0_i32, %c0_i32_0 : i32, i32, i32
  }
  func.func @transform_5(%arg0: i32, %arg1: i32) -> (i32, i32, i32) {
    %c0_i32 = arith.constant 0 : i32
    %c0_i32_0 = arith.constant 0 : i32
    return %arg0, %arg1, %c0_i32 : i32, i32, i32
  }
  func.func @transform_6(%arg0: i32, %arg1: i32) -> (i32, i32, i32) {
    %c0_i32 = arith.constant 0 : i32
    %c0_i32_0 = arith.constant 0 : i32
    return %arg0, %c0_i32, %arg1 : i32, i32, i32
  }
  func.func @transform_7(%arg0: i32, %arg1: i32) -> (i32, i32, i32) {
    %c0_i32 = arith.constant 0 : i32
    %c0_i32_0 = arith.constant 0 : i32
    %c0_i32_1 = arith.constant 0 : i32
    return %arg0, %c0_i32, %c0_i32_0 : i32, i32, i32
  }
}

</mosaic_0001>

<bundles_post_ra>
// kernel: tpu_custom_call.1
= control target key start
LH: loop header
LB: loop body
LE: loop exit
PB: predicated region body
PF: predicated region fallthrough
CT: control target
= control target key end

     0   :  { %s1462_s0 = inlined_call_operand.vmem [shape: f32[8,32], index: 0, kind: input, shape index: {}]   ;;  %s1463_s1 = inlined_call_operand.vmem [shape: f32[3,32,32], index: 1, kind: input, shape index: {}]   ;;  %s1464_s2 = inlined_call_operand.vmem [shape: f32[3,3,32], index: 2, kind: input, shape index: {}]   ;;  %s1465_s3 = inlined_call_operand.vmem [shape: f32[3,16,32], index: 3, kind: input, shape index: {}]   ;;  %s1466_s4 = inlined_call_operand.vmem [shape: f32[3,1,16], index: 4, kind: input, shape index: {}]   ;;  %s1467_s5 = inlined_call_operand.vmem [shape: f32[3,256,16], index: 5, kind: input, shape index: {}]   ;;  %s1468_s6 = inlined_call_operand.hbm [shape: f32[3,8,256], index: 6, kind: output, shape index: {0}]   ;;  %s1469_s7 = inlined_call_operand.hbm [shape: f32[3,8,16], index: 7, kind: output, shape index: {1}]  }
   0x1   :  { %1492 = sst [smem:[#allocation26_spill]] %s1468_s6 }
   0x2   :  { %1493 = sst [smem:[#allocation27_spill]] %s1469_s7 }
   0x3   :  { %13 = vsyncpa [#allocation4], 0 }
   0x4   :  { %15 = vsyncpa [#allocation4 + $0x1], 0 }
   0x5   :  { %16 = vsyncpa [#allocation6], 0 }
   0x6   :  { %18 = vsyncpa [#allocation6 + $0x1], 0  ;;  %s1166_s24 = smov 0   ;;  %s1168_s25 = smov 0  }
   0x7   :  { %s1170_s26 = smov 0   ;;  %s1172_s27 = smov 0  }
   0x8   :  { %s1174_s28 = smov 0   ;;  %s1176_s29 = smov 0  }
   0x9   :  { %s1178_s30 = smov 0   ;;  %s1180_s8 = smov 0  }
   0xa   :  { %s1182_s9 = smov 0   ;;  %s1184_s10 = smov 0  }
   0xb   :  { %s1186_s11 = smov 0  }
   0xc LB: > { %1494 = sst [smem:[#allocation9_spill]] %s1083_s24  ;;  %s815_s12 = sadd.s32 4294967295, %s1123_s11   ;;  %s1123_s11 = sphi %s1186_s11, %s24_s11   ;;  %s1119_s10 = sphi %s1184_s10, %s1539_s10   ;;  %s1115_s9 = sphi %s1182_s9, %s1538_s9   ;;  %s1111_s8 = sphi %s1180_s8, %s1537_s8   ;;  %s1107_s30 = sphi %s1178_s30, %s1536_s30   ;;  %s1103_s29 = sphi %s1176_s29, %s1535_s29   ;;  %s1099_s28 = sphi %s1174_s28, %s1534_s28   ;;  %s1095_s27 = sphi %s1172_s27, %s1533_s27   ;;  %s1091_s26 = sphi %s1170_s26, %s1532_s26   ;;  %s1087_s25 = sphi %s1168_s25, %s1531_s25   ;;  %s1083_s24 = sphi %s1166_s24, %s1530_s24  }
   0xd   : > { %1495 = sst [smem:[#allocation10_spill]] %s1087_s25  ;;  %s816_s13 = sadd.s32 4294967294, %s1123_s11  }
   0xe   : > { %1496 = sst [smem:[#allocation11_spill]] %s1091_s26  ;;  %s33_s14 = sadd.s32 1, %s1115_s9 }
   0xf   : > { %1497 = sst [smem:[#allocation12_spill]] %s1095_s27  ;;  %s36_s15 = sadd.s32 1, %s1119_s10 }
  0x10   : > { %1498 = sst [smem:[#allocation13_spill]] %s1099_s28  ;;  %p34_p0 = scmp.ge.s32.totalorder %s33_s14, 2 }
  0x11   : > { %1499 = sst [smem:[#allocation14_spill]] %s1103_s29  ;;  %s198_s16 = sadd.s32 1, %s1103_s29 }
  0x12   : > { %1500 = sst [smem:[#allocation15_spill]] %s1115_s9  ;;  %p208_p1 = scmp.ne.s32.totalorder %s1103_s29, %s1099_s28 }
  0x13   : > { %1501 = sst [smem:[#allocation16_spill]] %s1119_s10  ;;  %p1228_p2 = scmp.eq.s32.totalorder %s815_s12, 5 }
  0x14   : > { %1502 = sst [smem:[#allocation17_spill]] %s1123_s11  ;;  %s1541_s14 = smov (%p34_p0, %s33_s14), 0 }
  0x15   : > { %1504 = sst [smem:[#allocation18_spill]] %s1541_s14  ;;  %s1543_s15 = smov (!%p34_p0, %s36_s15), %s1119_s10 }
  0x16   : > { %s194_s18 = ssub.s32 %s1115_s9, %s1541_s14  ;;  %p1239_p3 = por %p1228_p2, %p208_p1 }
  0x17   : > { %p38_p4 = scmp.ge.s32.totalorder %s1543_s15, 3  ;;  %p214_p5 = scmp.ne.s32.totalorder %s1099_s28, %s1095_s27 }
  0x18   : > { %s1505_s19 = scalar_select %p1239_p3, 1, 0 }
  0x19   : > { %p1245_p6 = scmp.eq.s32.totalorder %s816_s13, 5  ;;  %s224_s21 = sadd.s32 1, %s1091_s26 }
  0x1a   : > { %1506 = sst [smem:[#allocation19_spill]] %s1505_s19  ;;  %s1545_s15 = smov (%p38_p4, %s1543_s15), 0 }
  0x1b   : > { %1508 = sst [smem:[#allocation20_spill]] %s1545_s15  ;;  %p1254_p7 = por %p1245_p6, %p214_p5 }
  0x1c   : > { %p234_p8 = scmp.ne.s32.totalorder %s1091_s26, %s1087_s25  ;;  %s193_s23 = ssub.s32 %s1119_s10, %s1545_s15 }
  0x1d   : > { %s1509_s22 = scalar_select %p1254_p7, 1, 0 }
  0x1e   : > { %p240_p9 = scmp.ne.s32.totalorder %s1087_s25, %s1083_s24  ;;  %s195_s12 = sor.u32 %s194_s18, %s193_s23 }
  0x1f   : > { %1510 = sst [smem:[#allocation21_spill]] %s1509_s22  ;;  %p222_p10 = scmp.eq.s32.totalorder %s193_s23, 0 }
  0x20   : > { %p196_p11 = scmp.eq.s32.totalorder %s195_s12, 0  ;;  %p1266_p12 = por %p234_p8, %p1228_p2 }
  0x21   : > { %s1271_s14 = scalar_select %p222_p10, %s1091_s26, %s224_s21  }
  0x22   : > { %s1511_s13 = scalar_select %p1266_p12, 1, 0 }
  0x23   : > { %1513 = sst [smem:[#allocation23_spill]] %s1271_s14  ;;  %p1278_p13 = por %p240_p9, %p1245_p6 }
  0x24   : > { %1512 = sst [smem:[#allocation22_spill]] %s1511_s13  ;;  %p819_p0 = scmp.ge.s32.totalorder %s1123_s11, 1 }
  0x25   : > { %s1274_s9 = scalar_select %p196_p11, %s1103_s29, %s198_s16  }
  0x26   : > { %s1515_s27 = scalar_select %p1278_p13, 1, 0 }
  0x27   : > { %1514 = sst [smem:[#allocation24_spill]] %s1274_s9  ;;  %p304_p1 = scmp.lt.s32.totalorder %s1123_s11, 7 }
  0x28   : > { %1516 = sst [smem:[#allocation25_spill]] %s1515_s27 }
  0x29   : > { %p305_p4 = pnand %p819_p0, %p304_p1 }
  0x2a   : > { %s1475_s17 = sand.u32 (!%p305_p4), 1, %s1099_s28   ;;  %s1476_s18 = sand.u32 (!%p305_p4), 1, %s1087_s25  }
  0x2b   : > { %308 = sbr.rel (%p305_p4) target bundleno = 731 (0x2db), region = 44  ;;  %s1288_s16 = sshll.u32 (!%p305_p4), %s1475_s17, 3 }
  0x2c   : > { %s1292_s20 = sshll.u32 (!%p305_p4), %s1476_s18, 3  ;;  %p362_p2 = scmp.lt.s32.totalorder (!%p305_p4), %s1111_s8, 2 }
  0x2d   : > { %s827_s21 = sshll.u32 (!%p305_p4), %s1107_s30, 4  ;;  %s354_s17 = scalar_lea.vmem (!%p305_p4), [#allocation3], %s1288_s16 }
  0x2e   : > { %p382_p5 = scmp.lt.s32.totalorder (!%p305_p4), %s827_s21, 31  ;;  %s361_s29 = scalar_lea.vmem (!%p305_p4), [#allocation5], %s1292_s20 }
  0x2f   : > { %p830_p6 = scmp.ne.s32.totalorder (!%p305_p4), %s1107_s30, 0 }
  0x30   : > { %s1297_s23 = scalar_select %p362_p2, %s1111_s8, 2 }
  0x31   : > { %s1547_s21 = smov (!%p382_p5, %s827_s21), 31 }
  0x32   : > { %s863_s12 = sshll.u32 %s1297_s23, 5  ;;  %s824_s15 = sshll.u32 %s1297_s23, 2 }
  0x33   : > { %s366_s9 = scalar_lea.vmem %s1463_s1, %s863_s12  ;;  %s370_s14 = scalar_lea.vmem %s1464_s2, %s824_s15 }
  0x34   : > { %s864_s26 = sshll.u32 %s1297_s23, 4  ;;  %s378_s22 = scalar_lea.vmem %s1466_s4, %s1297_s23 }
  0x35   : > { %s1315_s19 = scalar_lea.vmem %s1465_s3, %s864_s26  ;;  %s385_s28 = sadd.s32 %s863_s12, %s1547_s21 }
  0x36   : > { %s829_s7 = sshll.u32 %s385_s28, 3  ;;  %392 = sbr.rel (%p830_p6) target bundleno = 538 (0x21a), region = 48 }
  0x37   : > { %s1320_s10 = scalar_lea.vmem %s1467_s5, %s829_s7 }
  0x3b   : > { %v397_v0 = vld [vmem:[%s366_s9 + $0x18] sm:$0xff]  ;;  %vm400_vm0 = vcmask 261120   ;;  %v396_v1 = vld [vmem:[%s366_s9 + $0x10] sm:$0xff]  ;;  %v395_v2 = vld [vmem:[%s366_s9 + $0x8] sm:$0xff]  ;;  %v1125_v5 = vmov 8.0   ;;  %vm514_vm5 = vcmask 130048  }
  0x3c   : > { %831 = vmatpush.xpose.msk.msra.mxu0 %vm400_vm0, %v397_v0  ;;  %v394_v3 = vld [vmem:[%s366_s9] sm:$0xff]  ;;  %967 = vrcp.f32 %v1125_v5  ;;  %v479_v30 = vld [vmem:[%s1315_s19 + $0x8] sm:$0xff] }
  0x3d   : > { %v393_v4 = vld [vmem:[%s1462_s0] sm:$0xff]  ;;  %836 = vmatpush.xpose.msk.msra.mxu1 %vm400_vm0, %v479_v30 }
  0x3e   : > { %v398_v7 = vld [vmem:[%s370_s14] sm:$0x7] }
  0x3f   : > { %v399_v8 = vperm.slane %v398_v7, 0  ;;  %v478_v32 = vld [vmem:[%s1315_s19] sm:$0xff]  ;;  %v475_v46 = vperm.slane %v398_v7, 2 }
  0x40   : > { %832 = vmatpush.xpose.msk.msra.mxu0 %vm400_vm0, %v396_v1  ;;  %v966_v50 = vld [vmem:[%s378_s22] ss:$0 sm:$0xff] }
  0x41   : > { %837 = vmatpush.xpose.msk.msra.mxu1 %vm400_vm0, %v478_v32 }
  0x42   : > { %v968_v6 = vpop.eup %967 }
  0x43   : > { %v444_v9 = vmul.f32 8.0, %v968_v6  ;;  %vm448_vm1 = vweird.f32 %v968_v6 }
  0x44   : > { %833 = vmatpush.xpose.msk.msra.mxu0 %vm400_vm0, %v395_v2 }
  0x45   : > { %v445_v12 = vsub.f32 1.0, %v444_v9 }
  0x47   : > { %v446_v15 = vmul.f32 %v968_v6, %v445_v12 }
  0x48   : > { %834 = vmatpush.xpose.msk.msra.mxu0 %vm400_vm0, %v394_v3 }
  0x49   : > { %v447_v18 = vadd.f32 %v968_v6, %v446_v15 }
  0x4b   : > { %835 = vmatmul.msk.f32.vlgmr.msra.gmra.mxu0 %vm400_vm0, %v393_v4  ;;  %v449_v21 = vsel %vm448_vm1, %v968_v6, %v447_v18 }
  0xc8   : > { %v433_v10 = vpop.f32.mrf.mxu0 }
  0xc9   : > { %v434_v11 = vadd.f32 %v433_v10, %v399_v8 }
  0xcb   : > { %v436_v13 = vsel %vm400_vm0, %v434_v11, 0.0 }
  0xcc   : > { %v437_v14 = vrot.slane %v436_v13, 4 }
  0xce   : > { %v438_v16 = vadd.f32 %v437_v14, %v436_v13 }
  0xd0   : > { %v439_v17 = vrot.slane %v438_v16, 2 }
  0xd2   : > { %v440_v19 = vadd.f32 %v439_v17, %v438_v16 }
  0xd4   : > { %v441_v20 = vrot.slane %v440_v19, 1 }
  0xd6   : > { %v442_v22 = vadd.f32 %v441_v20, %v440_v19 }
  0xd8   : > { %v450_v23 = vmul.f32 %v449_v21, %v442_v22 }
  0xda   : > { %v451_v24 = vsub.f32 %v434_v11, %v450_v23 }
  0xdc   : > { %v452_v25 = vmul.f32 %v451_v24, %v451_v24 }
  0xde   : > { %v453_v26 = vsel %vm400_vm0, %v452_v25, 0.0 }
  0xdf   : > { %v454_v27 = vrot.slane %v453_v26, 4 }
  0xe1   : > { %v455_v28 = vadd.f32 %v454_v27, %v453_v26 }
  0xe3   : > { %v456_v29 = vrot.slane %v455_v28, 2 }
  0xe5   : > { %v457_v31 = vadd.f32 %v456_v29, %v455_v28 }
  0xe7   : > { %v458_v33 = vrot.slane %v457_v31, 1 }
  0xe9   : > { %v459_v34 = vadd.f32 %v458_v33, %v457_v31 }
  0xeb   : > { %v460_v35 = vmul.f32 %v459_v34, %v449_v21 }
  0xed   : > { %v461_v36 = vadd.f32 1e-05, %v460_v35 }
  0xef   : > { %969 = vrsqrt.f32 %v461_v36  ;;  %vm468_vm3 = vweird.f32 %v461_v36 }
  0xf5   : > { %v970_v37 = vpop.eup %969 }
  0xf6   : > { %v463_v38 = vmul.f32 %v970_v37, %v461_v36  ;;  %vm469_vm2 = vweird.f32 %v970_v37 }
  0xf7   : > { %vm470_vm4 = vmor %vm468_vm3, %vm469_vm2 }
  0xf8   : > { %v464_v39 = vmul.f32 %v970_v37, %v463_v38 }
  0xfa   : > { %v465_v40 = vmul.f32 0.5, %v464_v39 }
  0xfc   : > { %v466_v41 = vsub.f32 1.5, %v465_v40 }
  0xfe   : > { %v467_v42 = vmul.f32 %v970_v37, %v466_v41 }
 0x100   : > { %v471_v43 = vsel %vm470_vm4, %v970_v37, %v467_v42 }
 0x101   : > { %v472_v44 = vmul.f32 %v471_v43, %v398_v7 }
 0x103   : > { %v473_v45 = vperm.slane %v472_v44, 1 }
 0x105   : > { %v474_v47 = vmul.f32 %v473_v45, %v451_v24 }
 0x107   : > { %v476_v48 = vadd.f32 %v475_v46, %v474_v47 }
 0x109   : > { %v477_v49 = vmax.f32 %v476_v48, 0.0 }
 0x10b   : > { %838 = vmatmul.msk.f32.vlgmr.msra.gmra.mxu1 %vm400_vm0, %v477_v49 }
 0x188   : > { %v510_v51 = vpop.f32.mrf.mxu1 }
 0x189   : > { %v511_v52 = vadd.f32 %v966_v50, %v510_v51 }
 0x18b   : > { %v513_v53 = vmul.f32 %v511_v52, %v511_v52 }
 0x18d   : > { %v515_v54 = vsel %vm514_vm5, %v513_v53, 0.0 }
 0x18e   : > { %516 = vadd.xlane.f32.xlu0 %v515_v54 }
 0x201   : > { %v517_v55 = vpop.xlane.xlu0 %516 }
 0x202   : > { %v518_v56 = vmax.f32 %v517_v55, 1e-24 }
 0x204   : > { %971 = vrsqrt.f32 %v518_v56  ;;  %vm525_vm7 = vweird.f32 %v518_v56 }
 0x20a   : > { %v972_v57 = vpop.eup %971 }
 0x20b   : > { %v520_v58 = vmul.f32 %v972_v57, %v518_v56  ;;  %vm526_vm6 = vweird.f32 %v972_v57 }
 0x20c   : > { %vm527_vm8 = vmor %vm525_vm7, %vm526_vm6 }
 0x20d   : > { %v521_v59 = vmul.f32 %v972_v57, %v520_v58 }
 0x20f   : > { %v522_v60 = vmul.f32 0.5, %v521_v59 }
 0x211   : > { %v523_v61 = vsub.f32 1.5, %v522_v60 }
 0x213   : > { %v524_v62 = vmul.f32 %v972_v57, %v523_v61 }
 0x215   : > { %v528_v63 = vsel %vm527_vm8, %v972_v57, %v524_v62 }
 0x216   : > { %v529_v0 = vmul.f32 %v528_v63, %v511_v52 }
 0x218   : > { %530 = vst.msk [vmem:[#allocation2] sm:$0xff] %vm514_vm5, %v529_v0 }
 0x219   : > { %531 = vst.msk [vmem:[%s361_s29] sm:$0xff] %vm514_vm5, %v529_v0 }
 0x21a PF: > { %v548_v1 = vld [vmem:[%s1320_s10 + $0x78] sm:$0xff]  ;;  %vm549_vm9 = vcmask 130048   ;;  %v547_v2 = vld [vmem:[%s1320_s10 + $0x70] sm:$0xff]  ;;  %v546_v3 = vld [vmem:[%s1320_s10 + $0x68] sm:$0xff]  ;;  %s1517_s26 = sld [smem:[#allocation10_spill]]  ;;  %s860_s28 = sshll.u32 %s1111_s8, 3 }
 0x21b   : > { %839 = vmatpush.xpose.msk.msra.mxu0 %vm549_vm9, %v548_v1  ;;  %v545_v4 = vld [vmem:[%s1320_s10 + $0x60] sm:$0xff]  ;;  %v544_v5 = vld [vmem:[%s1320_s10 + $0x58] sm:$0xff]  ;;  %v543_v6 = vld [vmem:[%s1320_s10 + $0x50] sm:$0xff]  ;;  %s1519_s14 = sld [smem:[#allocation27_spill]]  ;;  %s656_s19 = sshll.u32 %s361_s29, 4  ;;  %s657_s19 = int_to_ptr.vmem [resolvable:$true] %s656_s19 }
 0x21c   : > { %v542_v7 = vld [vmem:[%s1320_s10 + $0x48] sm:$0xff]  ;;  %v541_v8 = vld [vmem:[%s1320_s10 + $0x40] sm:$0xff]  ;;  %v540_v9 = vld [vmem:[%s1320_s10 + $0x38] sm:$0xff] }
 0x21d   : > { %v539_v10 = vld [vmem:[%s1320_s10 + $0x30] sm:$0xff]  ;;  %v538_v11 = vld [vmem:[%s1320_s10 + $0x28] sm:$0xff]  ;;  %v537_v12 = vld [vmem:[%s1320_s10 + $0x20] sm:$0xff] }
 0x21e   : > { %v536_v13 = vld [vmem:[%s1320_s10 + $0x18] sm:$0xff]  ;;  %v535_v14 = vld [vmem:[%s1320_s10 + $0x10] sm:$0xff]  ;;  %v534_v15 = vld [vmem:[%s1320_s10 + $0x8] sm:$0xff] }
 0x21f   : > { %840 = vmatpush.xpose.msk.msra.mxu0 %vm549_vm9, %v547_v2  ;;  %v533_v16 = vld [vmem:[%s1320_s10] sm:$0xff] }
 0x220   : > { %v532_v17 = vld [vmem:[#allocation2] sm:$0xff]  ;;  %s1520_s13 = sand.u32 1, %s1517_s26  }
 0x221   : > { %s654_s15 = scalar_lea.hbm %s1519_s14, %s860_s28  ;;  %s628_s18 = scalar_lea.sflag [#allocation6], %s1520_s13 }
 0x222   : > { %s658_s22 = sshll.u32 %s654_s15, 4  ;;  %s993_s6 = scalar_lea.hbm %s1519_s14, 24  ;;  %s659_s22 = int_to_ptr.hbm [resolvable:$true] %s658_s22 }
 0x223   : > { %841 = vmatpush.xpose.msk.msra.mxu0 %vm549_vm9, %v546_v3  ;;  %s987_s21 = sshra.s32 %s659_s22, 4  ;;  %s988_s21 = int_to_ptr.hbm [resolvable:$true] %s987_s21 }
 0x224   : > { %s989_s23 = scalar_lea.hbm %s988_s21, 8  ;;  %p994_p11 = scmp.lt.s32.totalorder %s988_s21, %s1519_s14 }
 0x225   : > { %p990_p8 = scmp.ne.s32.totalorder %s988_s21, %s989_s23  ;;  %p995_p0 = scmp.lt.s32.totalorder %s993_s6, %s989_s23 }
 0x227   : > { %842 = vmatpush.xpose.msk.msra.mxu0 %vm549_vm9, %v545_v4  ;;  %p991_p9 = pnand %p990_p8, %p1266_p12  ;;  %p996_p1 = por %p995_p0, %p994_p11 }
 0x229   : > { %p992_p10 = pneg %p991_p9 }
 0x22b   : > { %843 = vmatpush.xpose.msk.msra.mxu0 %vm549_vm9, %v544_v5  ;;  %p997_p4 = pnand %p996_p1, %p992_p10 }
 0x22f   : > { %844 = vmatpush.xpose.msk.msra.mxu0 %vm549_vm9, %v543_v6 }
 0x233   : > { %845 = vmatpush.xpose.msk.msra.mxu0 %vm549_vm9, %v542_v7 }
 0x237   : > { %846 = vmatpush.xpose.msk.msra.mxu0 %vm549_vm9, %v541_v8 }
 0x23b   : > { %847 = vmatpush.xpose.msk.msra.mxu0 %vm549_vm9, %v540_v9 }
 0x23f   : > { %848 = vmatpush.xpose.msk.msra.mxu0 %vm549_vm9, %v539_v10 }
 0x243   : > { %849 = vmatpush.xpose.msk.msra.mxu0 %vm549_vm9, %v538_v11 }
 0x247   : > { %850 = vmatpush.xpose.msk.msra.mxu0 %vm549_vm9, %v537_v12 }
 0x24b   : > { %851 = vmatpush.xpose.msk.msra.mxu0 %vm549_vm9, %v536_v13 }
 0x24f   : > { %852 = vmatpush.xpose.msk.msra.mxu0 %vm549_vm9, %v535_v14 }
 0x253   : > { %853 = vmatpush.xpose.msk.msra.mxu0 %vm549_vm9, %v534_v15 }
 0x257   : > { %854 = vmatpush.xpose.msk.msra.mxu0 %vm549_vm9, %v533_v16 }
 0x25a   : > { %855 = vmatmul.msk.f32.vlgmr.msra.gmra.mxu0 %vm549_vm9, %v532_v17 }
 0x25b   : > { %1000 = shalt.err (!%p997_p4)
}
 0x25c   : > { %s1521_s20 = sld [smem:[#allocation13_spill]]  ;;  %s858_s25 = sshll.u32 %s1111_s8, 1 }
 0x25d   : > { %866 = dma.vmem_to_hbm [thread:$0]  (%p1266_p12), %s657_s19, 128, %s659_s22, %s628_s18  }
 0x25e   : > { %s638_s26 = sadd.s32 %s1107_s30, %s858_s25  ;;  %s1523_s15 = sld [smem:[#allocation26_spill]] }
 0x25f   : > { %s859_s28 = sshll.u32 %s638_s26, 3  ;;  %s642_s21 = sshll.u32 %s354_s17, 4  ;;  %s643_s21 = int_to_ptr.vmem [resolvable:$true] %s642_s21 }
 0x262   : > { %s1524_s27 = sand.u32 1, %s1521_s20  }
 0x263   : > { %s623_s12 = scalar_lea.sflag [#allocation4], %s1524_s27 }
 0x264   : > { %s640_s13 = scalar_lea.hbm %s1523_s15, %s859_s28  ;;  %s1021_s22 = scalar_lea.hbm %s1523_s15, 48 }
 0x265   : > { %s644_s23 = sshll.u32 %s640_s13, 4  ;;  %s645_s23 = int_to_ptr.hbm [resolvable:$true] %s644_s23 }
 0x266   : > { %s1015_s10 = sshra.s32 %s645_s23, 4  ;;  %s1016_s10 = int_to_ptr.hbm [resolvable:$true] %s1015_s10 }
 0x267   : > { %s1017_s19 = scalar_lea.hbm %s1016_s10, 8  ;;  %p1022_p6 = scmp.lt.s32.totalorder %s1016_s10, %s1523_s15 }
 0x268   : > { %p1018_p12 = scmp.ne.s32.totalorder %s1016_s10, %s1017_s19  ;;  %p1023_p8 = scmp.lt.s32.totalorder %s1021_s22, %s1017_s19 }
 0x26a   : > { %p1019_p2 = pnand %p1018_p12, %p1239_p3  ;;  %p1024_p9 = por %p1023_p8, %p1022_p6 }
 0x26c   : > { %p1020_p5 = pneg %p1019_p2 }
 0x26e   : > { %p1025_p10 = pnand %p1024_p9, %p1020_p5 }
 0x2d7   : > { %v618_v18 = vpop.f32.mrf.mxu0 }
 0x2d8   : > { %621 = vst [vmem:[%s354_s17] sm:$0xff] %v618_v18 }
 0x2d9   : > { %1028 = shalt.err (!%p1025_p10)
}
 0x2da   : > { %865 = dma.vmem_to_hbm [thread:$0]  (%p1239_p3), %s643_s21, 128, %s645_s23, %s623_s12  }
 0x2db PF: > { %s1525_s16 = sld [smem:[#allocation17_spill]] }
 0x2dc   : > { %s1526_s17 = sld [smem:[#allocation12_spill]] }
 0x2e1   : > { %p876_p11 = scmp.ge.s32.totalorder %s1525_s16, 2 }
 0x2e2   : > { %s670_s24 = sand.u32 1, %s1526_s17  }
 0x2e3   : > { %p870_p0 = pnand %p876_p11, %p1254_p7  ;;  %s671_s20 = scalar_lea.sflag [#allocation4], %s670_s24 }
 0x2e5   : > { %p871_p1 = pneg %p870_p0 }
 0x2e7   : > { %1074 = dma.done.wait (%p871_p1), %s671_s20, 128  }
 0x2e8   : > { %1076 = vsyncadd (%p871_p1), %s671_s20, 4294967168  ;;  %s1528_s25 = sld [smem:[#allocation9_spill]]  ;;  %p873_p4 = pnand %p876_p11, %p1278_p13 }
 0x2ea   : > { %p874_p12 = pneg %p873_p4 }
 0x2ee   : > { %s680_s28 = sand.u32 1, %s1528_s25  }
 0x2ef   : > { %s681_s29 = scalar_lea.sflag [#allocation6], %s680_s28 }
 0x2f0   : > { %1078 = dma.done.wait (%p874_p12), %s681_s29, 128  }
 0x2f1   : > { %1080 = vsyncadd (%p874_p12), %s681_s29, 4294967168  ;;  %s24_s11 = sadd.s32 1, %s1525_s16   ;;  %s1530_s24 = sld [smem:[#allocation10_spill]] }
 0x2f2   : > { %p21_p3 = scmp.ge.s32.totalorder %s24_s11, 8   ;;  %s1531_s25 = sld [smem:[#allocation11_spill]] }
 0x2f3   : > { %s1532_s26 = sld [smem:[#allocation23_spill]] }
 0x2f4   : > { %s1533_s27 = sld [smem:[#allocation13_spill]] }
 0x2f5   : > { %s1534_s28 = sld [smem:[#allocation14_spill]] }
 0x2f6   : > { %s1535_s29 = sld [smem:[#allocation24_spill]]  ;;  %23 = sbr.rel (!%p21_p3) target bundleno = 12 (0xc), region = 112 }
 0x2f7   : > { %s1536_s30 = sld [smem:[#allocation15_spill]] }
 0x2f8   : > { %s1537_s8 = sld [smem:[#allocation16_spill]] }
 0x2f9   : > { %s1538_s9 = sld [smem:[#allocation18_spill]] }
 0x2fa   : > { %s1539_s10 = sld [smem:[#allocation20_spill]] }
 0x2fb   :  { %687 = vsyncpa [#allocation4], 1 }
 0x2fc   :  { %689 = vsyncpa [#allocation4 + $0x1], 1 }
 0x2fd   :  { %690 = vsyncpa [#allocation6], 1 }
 0x2fe   :  { %692 = vsyncpa [#allocation6 + $0x1], 1 }

</bundles_post_ra>
